<compile_context>
chip_gen: v5e
topology: v5e:2x2
jax: 0.10.0
libtpu: 0.0.40
codegen_flags: <defaults>
</compile_context>

<pallas_src>
import jax
import jax.numpy as jnp
import numpy as np
from jax.experimental import pallas as pl
from jax.experimental.pallas import tpu as pltpu

LN_EPS = 1e-5  # PyTorch nn.LayerNorm default


def _round_up(v, m):
    return ((v + m - 1) // m) * m


def _vmem_capacity_bytes():
    """Physical VMEM per TensorCore (generation-aware tile sizing)."""
    try:
        info = pltpu.get_tpu_info()
        cap = int(getattr(info, "vmem_capacity_bytes", 0) or 0)
        if cap > 0:
            return cap
    except Exception:
        pass
    return 64 << 20  # conservative fallback = v7x per-TC capacity


# --------------------------------------------------------------------------
# Pallas kernel: fused  (x @ W + b)  ->  LayerNorm(gamma, beta)
# --------------------------------------------------------------------------
def _patch_embed_kernel(x_ref, w_ref, p_ref, o_ref):
    # x_ref: (TM, P) patch rows (compute dtype, e.g. bf16)  -- streamed
    # w_ref: (P,  D) linear weight in [in, out] layout      -- resident
    # p_ref: (3,  D) f32 packed [bias; ln_gamma; ln_beta]   -- resident
    # o_ref: (TM, D) output (f32 or bf16)
    params = p_ref[...]                                # (3, D) f32
    bias, gamma, beta = params[0:1], params[1:2], params[2:3]

    # Linear on the MXU: native-dtype operands, f32 accumulation.
    y = jnp.dot(x_ref[...], w_ref[...],
                preferred_element_type=jnp.float32) + bias

    # LayerNorm over the embed dim (biased variance, PyTorch semantics), f32.
    # One pass over y: E[y] and E[y^2] -> var = E[y^2] - E[y]^2 (halves the
    # VPU work vs. a second pass over centered values; matters on v5e where
    # the epilogue is not free filler). rsqrt goes to the EUP.
    d_inv = 1.0 / y.shape[-1]
    mean = jnp.sum(y, axis=-1, keepdims=True) * d_inv
    ex2 = jnp.sum(y * y, axis=-1, keepdims=True) * d_inv
    var = jnp.maximum(ex2 - mean * mean, 0.0)
    y_norm = (y - mean) * jax.lax.rsqrt(var + LN_EPS)

    o_ref[...] = (y_norm * gamma + beta).astype(o_ref.dtype)


def _choose_row_tile(M, P, D, x_isz, out_isz, w_bytes, cap):
    """Row tile: as large as a generation-aware VMEM budget allows (cap 1024),
    MXU-aligned (256 for v6e/v7x-sized problems, 128 for v5e) when that does
    not blow up row padding, and with an even number of grid steps >= 2 so
    pipelining kicks in and the two v7x TensorCores get equal work."""
    per_row = 2 * (P * x_isz + D * out_isz)            # double-buffered in + out
    budget = max(int(cap * 0.40) - 2 * w_bytes, 2 << 20)
    tm_max = int(min(1024, max(8, budget // per_row)))
    tm_max = max(8, (tm_max // 8) * 8)

    align = 8
    for a in (256, 128):                               # MXU-width alignment if it fits
        if tm_max >= a and M >= 2 * a:
            align = a
            break

    steps = max(2, pl.cdiv(M, tm_max))
    steps += steps % 2                                 # even step count (2 TCs on v7x)

    tm_aligned = min(_round_up(pl.cdiv(M, steps), align), tm_max)
    tm_tight = min(_round_up(pl.cdiv(M, steps), 8), tm_max)
    # Prefer the MXU-aligned tile unless it inflates padded rows by > ~6%.
    if _round_up(M, tm_aligned) <= (_round_up(M, tm_tight) * 17) // 16:
        return int(max(8, tm_aligned))
    return int(max(8, tm_tight))


def _fused_linear_layernorm(x2d, w, params, out_dtype):
    """[M, P] -> [M, D] = LayerNorm(x2d @ w + bias) * gamma + beta."""
    M, P = x2d.shape
    D = w.shape[1]
    x_isz = x2d.dtype.itemsize
    w_isz = w.dtype.itemsize
    out_isz = jnp.dtype(out_dtype).itemsize
    cap = _vmem_capacity_bytes()

    tm = _choose_row_tile(M, P, D, x_isz, out_isz, P * D * w_isz, cap)
    m_pad = _round_up(M, tm)
    if m_pad != M:
        # Zero-padded rows produce finite garbage (== LN of the bias row) and
        # are sliced off below; keeps every block full and 8-row aligned.
        x2d = jnp.pad(x2d, ((0, m_pad - M), (0, 0)))
    grid = (m_pad // tm,)

    # Explicit scoped-VMEM request sized from actual usage, clamped to 3/4 of
    # this generation's physical VMEM (64 MiB/TC on v7x, 128 MiB on v5e/v6e).
    vmem_est = (2 * tm * (P * x_isz + D * out_isz)     # double-buffered in/out tiles
                + 2 * P * D * w_isz                    # weight (assume 2 buffers)
                + 2 * 3 * _round_up(D, 128) * 4)       # packed bias/gamma/beta
    vmem_limit = int(min(max(2 * vmem_est, 16 << 20), (cap * 3) // 4, 100 << 20))

    # TODO(synk): the weight / params blocks have constant index maps; if the
    # lowered VMEM report shows Mosaic still double-buffers them, request
    # pipeline_mode=pl.Buffered(1) on those two BlockSpecs to reclaim
    # P*D*w_isz bytes for a larger row tile (mainly matters on v7x 64 MiB/TC).
    out = pl.pallas_call(
        _patch_embed_kernel,
        out_shape=jax.ShapeDtypeStruct((m_pad, D), out_dtype),
        grid_spec=pltpu.PrefetchScalarGridSpec(
            num_scalar_prefetch=0,
            grid=grid,
            in_specs=[
                pl.BlockSpec((tm, P), lambda i: (i, 0)),   # streamed patch rows
                pl.BlockSpec((P, D), lambda i: (0, 0)),    # resident weight
                pl.BlockSpec((3, D), lambda i: (0, 0)),    # packed bias/gamma/beta
            ],
            out_specs=pl.BlockSpec((tm, D), lambda i: (i, 0)),
        ),
        compiler_params=pltpu.CompilerParams(
            dimension_semantics=("parallel",),
            vmem_limit_bytes=vmem_limit,
        ),
    )(x2d, w, params)
    return out[:M] if m_pad != M else out


# --------------------------------------------------------------------------
# PatchEmbed module (JAX glue + Pallas hot path)
# --------------------------------------------------------------------------
class PatchEmbed:
    def __init__(self, img_size, patch_size, in_chans=3, embed_dim=768,
                 compute_dtype=jnp.bfloat16, out_dtype=jnp.float32, key=None):
        self.img_size = tuple(img_size)
        self.patch_size = tuple(patch_size)
        self.in_chans = in_chans
        self.embed_dim = embed_dim
        self.compute_dtype = compute_dtype
        self.out_dtype = out_dtype
        self.grid_size = (img_size[0] // patch_size[0],
                          img_size[1] // patch_size[1])
        self.num_patches = self.grid_size[0] * self.grid_size[1]
        self.patch_dim = patch_size[0] * patch_size[1] * in_chans
        # The torch module passes p1,p2 = grid_size to Rearrange while the
        # Linear input dim comes from patch_size; it only type-checks when the
        # two flattened patch sizes agree (e.g. grid_size == patch_size).
        assert self.grid_size[0] * self.grid_size[1] * in_chans == self.patch_dim, (
            "Rearrange(p1,p2=grid_size) feature dim "
            f"{self.grid_size[0] * self.grid_size[1] * in_chans} != Linear in_dim "
            f"{self.patch_dim}; the original torch module only supports "
            "configurations where grid_size == patch_size.")

        if key is None:
            key = jax.random.PRNGKey(0)
        kw, kb = jax.random.split(key)
        bound = 1.0 / np.sqrt(self.patch_dim)
        # nn.Linear weight is [out, in]; stored transposed [in, out] for x @ W,
        # kept in the MXU compute dtype (bf16 by default).
        self.w = jax.random.uniform(
            kw, (self.patch_dim, embed_dim), jnp.float32, -bound, bound
        ).astype(compute_dtype)
        bias = jax.random.uniform(kb, (1, embed_dim), jnp.float32, -bound, bound)
        gamma = jnp.ones((1, embed_dim), jnp.float32)   # LN affine defaults
        beta = jnp.zeros((1, embed_dim), jnp.float32)
        # Packed (3, D) f32 block: [bias; gamma; beta] (one resident input).
        self.params = jnp.concatenate([bias, gamma, beta], axis=0)

    def _patch_rows(self, x):
        """einops 'b c (h p1) (w p2) -> b (h w) (p1 p2 c)', p1,p2 = grid_size
        (exactly as in the torch module), emitted directly as the 2-D
        [b*n, P] slab in the compute dtype so XLA fuses transpose + reshape +
        cast into a single pass feeding the kernel."""
        b, c, H, W = x.shape
        p1, p2 = self.grid_size
        h, w = H // p1, W // p2
        x = x.reshape(b, c, h, p1, w, p2)            # b c h p1 w p2
        x = jnp.transpose(x, (0, 2, 4, 3, 5, 1))     # b h w p1 p2 c
        return x.reshape(b * h * w, p1 * p2 * c).astype(self.compute_dtype)

    def __call__(self, x):
        """x: [b, c, H, W] -> [b, n, embed_dim] in self.out_dtype."""
        # TODO(synk): fully fusing the rearrange into the kernel (single HBM
        # pass) requires sub-(8,128) lane shuffles of the (p1 p2 c)-interleaved
        # features inside the kernel, or a per-patch DMA gather of C*p1*p2
        # tiny strided copies; neither lowers cleanly today, so the gather
        # stays as one fused XLA transpose+cast pass.
        b = x.shape[0]
        rows = self._patch_rows(x)                                   # [b*n, P]
        out2d = _fused_linear_layernorm(rows, self.w, self.params,
                                        self.out_dtype)
        return out2d.reshape(b, self.num_patches, self.embed_dim)


# --------------------------------------------------------------------------
# Pure-JAX reference (same bf16 matmul operands, f32 accumulation + LN)
# --------------------------------------------------------------------------
def _reference(module, x):
    rows = module._patch_rows(x)
    y = jnp.dot(rows, module.w, preferred_element_type=jnp.float32)
    y = y + module.params[0]
    mean = jnp.mean(y, axis=-1, keepdims=True)
    cent = y - mean
    var = jnp.mean(cent * cent, axis=-1, keepdims=True)
    yn = cent * jax.lax.rsqrt(var + LN_EPS)
    out = yn * module.params[1] + module.params[2]
    return out.reshape(x.shape[0], module.num_patches,
                       module.embed_dim).astype(jnp.float32)


if __name__ == "__main__":
    # Small, self-consistent shapes (grid_size == patch_size, as the original
    # module requires): img 16x16, patch 4x4 -> grid 4x4, num_patches = 16,
    # patch_dim = 4*4*4 = 64, embed_dim = 32.  Rows M = 2*16 = 32 -> tm = 16,
    # grid = (2,) (two pipelined / megacore-shardable steps).
    B, C, H, W = 2, 4, 16, 16
    key = jax.random.PRNGKey(0)
    module = PatchEmbed(img_size=(H, W), patch_size=(4, 4),
                        in_chans=C, embed_dim=32, key=key)

    x = jax.random.normal(jax.random.PRNGKey(0), (B, C, H, W), jnp.float32)

    out = jax.block_until_ready(jax.jit(module.__call__)(x))
    ref = _reference(module, x)
    np.testing.assert_allclose(np.asarray(out), np.asarray(ref),
                               rtol=2e-3, atol=2e-3)
    assert out.shape == (B, module.num_patches, module.embed_dim)
    assert out.dtype == jnp.float32

    # Reduced-precision output path (review item 2): same weights, bf16 store
    # at the end of the kernel -> ~33% less streamed output HBM traffic.
    module_bf16 = PatchEmbed(img_size=(H, W), patch_size=(4, 4),
                             in_chans=C, embed_dim=32,
                             out_dtype=jnp.bfloat16, key=key)
    out_bf16 = jax.block_until_ready(jax.jit(module_bf16.__call__)(x))
    assert out_bf16.dtype == jnp.bfloat16
    np.testing.assert_allclose(np.asarray(out_bf16.astype(jnp.float32)),
                               np.asarray(ref), rtol=5e-2, atol=5e-2)

    print("KERNEL_OK")
</pallas_src>

<mosaic_0001>
module attributes {stable_mosaic.version = 11 : i64} {
  func.func @_patch_embed_kernel(%arg0: i32, %arg1: memref<16x64xbf16, #tpu.memory_space<vmem>>, %arg2: memref<64x32xbf16, #tpu.memory_space<vmem>>, %arg3: memref<3x32xf32, #tpu.memory_space<vmem>>, %arg4: memref<16x32xf32, #tpu.memory_space<vmem>>) attributes {dimension_semantics = [#tpu.dimension_semantics<parallel>], iteration_bounds = array<i64: 2>, scalar_prefetch = 0 : i64, scratch_operands = 0 : i64, tpu.core_type = #tpu.core_type<tc>, window_params = [{transform_indices = @transform_0, window_bounds = array<i64: 16, 64>}, {pipeline_mode = #tpu.pipeline_mode<synchronous>, transform_indices = @transform_1, window_bounds = array<i64: 64, 32>}, {pipeline_mode = #tpu.pipeline_mode<synchronous>, transform_indices = @transform_2, window_bounds = array<i64: 3, 32>}, {transform_indices = @transform_3, window_bounds = array<i64: 16, 32>}]} {
    %c0 = arith.constant 0 : index
    %c0_0 = arith.constant 0 : index
    %0 = vector.load %arg3[%c0, %c0_0] : memref<3x32xf32, #tpu.memory_space<vmem>>, vector<3x32xf32>
    %1 = vector.extract_strided_slice %0 {offsets = [0, 0], sizes = [1, 32], strides = [1, 1]} : vector<3x32xf32> to vector<1x32xf32>
    %2 = vector.extract_strided_slice %0 {offsets = [1, 0], sizes = [1, 32], strides = [1, 1]} : vector<3x32xf32> to vector<1x32xf32>
    %3 = vector.extract_strided_slice %0 {offsets = [2, 0], sizes = [1, 32], strides = [1, 1]} : vector<3x32xf32> to vector<1x32xf32>
    %c0_1 = arith.constant 0 : index
    %c0_2 = arith.constant 0 : index
    %4 = vector.load %arg1[%c0_1, %c0_2] : memref<16x64xbf16, #tpu.memory_space<vmem>>, vector<16x64xbf16>
    %c0_3 = arith.constant 0 : index
    %c0_4 = arith.constant 0 : index
    %5 = vector.load %arg2[%c0_3, %c0_4] : memref<64x32xbf16, #tpu.memory_space<vmem>>, vector<64x32xbf16>
    %cst = arith.constant dense<0.000000e+00> : vector<16x32xf32>
    %6 = tpu.matmul %4, %5, %cst {dimension_numbers = #tpu.dot_dimension_numbers<[1], [0], [0], [1], [0, 0, 1, 1], [], []>} : vector<16x64xbf16>, vector<64x32xbf16>, vector<16x32xf32> -> vector<16x32xf32>
    %7 = vector.broadcast %1 : vector<1x32xf32> to vector<16x32xf32>
    %8 = arith.addf %6, %7 : vector<16x32xf32>
    %cst_5 = arith.constant dense<0.000000e+00> : vector<16xf32>
    %9 = vector.multi_reduction <add>, %8, %cst_5 [1] : vector<16x32xf32> to vector<16xf32>
    %10 = vector.shape_cast %9 : vector<16xf32> to vector<16x1xf32>
    %cst_6 = arith.constant 3.125000e-02 : f32
    %11 = vector.broadcast %cst_6 : f32 to vector<16x1xf32>
    %12 = arith.mulf %10, %11 : vector<16x1xf32>
    %13 = arith.mulf %8, %8 : vector<16x32xf32>
    %cst_7 = arith.constant dense<0.000000e+00> : vector<16xf32>
    %14 = vector.multi_reduction <add>, %13, %cst_7 [1] : vector<16x32xf32> to vector<16xf32>
    %15 = vector.shape_cast %14 : vector<16xf32> to vector<16x1xf32>
    %cst_8 = arith.constant 3.125000e-02 : f32
    %16 = vector.broadcast %cst_8 : f32 to vector<16x1xf32>
    %17 = arith.mulf %15, %16 : vector<16x1xf32>
    %18 = arith.mulf %12, %12 : vector<16x1xf32>
    %19 = arith.subf %17, %18 : vector<16x1xf32>
    %cst_9 = arith.constant 0.000000e+00 : f32
    %20 = vector.broadcast %cst_9 : f32 to vector<16x1xf32>
    %21 = arith.maximumf %19, %20 : vector<16x1xf32>
    %22 = vector.broadcast %12 : vector<16x1xf32> to vector<16x32xf32>
    %23 = arith.subf %8, %22 : vector<16x32xf32>
    %cst_10 = arith.constant 9.99999974E-6 : f32
    %24 = vector.broadcast %cst_10 : f32 to vector<16x1xf32>
    %25 = arith.addf %21, %24 : vector<16x1xf32>
    %26 = math.rsqrt %25 : vector<16x1xf32>
    %27 = vector.broadcast %26 : vector<16x1xf32> to vector<16x32xf32>
    %28 = arith.mulf %23, %27 : vector<16x32xf32>
    %29 = vector.broadcast %2 : vector<1x32xf32> to vector<16x32xf32>
    %30 = arith.mulf %28, %29 : vector<16x32xf32>
    %31 = vector.broadcast %3 : vector<1x32xf32> to vector<16x32xf32>
    %32 = arith.addf %30, %31 : vector<16x32xf32>
    %c0_11 = arith.constant 0 : index
    %c0_12 = arith.constant 0 : index
    %33 = vector.load %arg4[%c0_11, %c0_12] : memref<16x32xf32, #tpu.memory_space<vmem>>, vector<16x32xf32>
    tpu.vector_store %arg4[%c0_11, %c0_12], %32 {strides = array<i32>} : memref<16x32xf32, #tpu.memory_space<vmem>>, vector<16x32xf32>,
    return
  }
  func.func @transform_0(%arg0: i32) -> (i32, i32) {
    %c0_i32 = arith.constant 0 : i32
    %c0_i32_0 = arith.constant 0 : i32
    return %arg0, %c0_i32 : i32, i32
  }
  func.func @transform_1(%arg0: i32) -> (i32, i32) {
    %c0_i32 = arith.constant 0 : i32
    %c0_i32_0 = arith.constant 0 : i32
    %c0_i32_1 = arith.constant 0 : i32
    return %c0_i32, %c0_i32_0 : i32, i32
  }
  func.func @transform_2(%arg0: i32) -> (i32, i32) {
    %c0_i32 = arith.constant 0 : i32
    %c0_i32_0 = arith.constant 0 : i32
    %c0_i32_1 = arith.constant 0 : i32
    return %c0_i32, %c0_i32_0 : i32, i32
  }
  func.func @transform_3(%arg0: i32) -> (i32, i32) {
    %c0_i32 = arith.constant 0 : i32
    %c0_i32_0 = arith.constant 0 : i32
    return %arg0, %c0_i32 : i32, i32
  }
}

</mosaic_0001>

<bundles_post_ra>
// kernel: a_call__.1
= control target key start
LH: loop header
LB: loop body
LE: loop exit
PB: predicated region body
PF: predicated region fallthrough
CT: control target
= control target key end

     0   :  { %8 = vsyncpa [#allocation3], 0  ;;  %s653_s0 = inlined_call_operand.vmem [shape: bf16[32,64], index: 0, kind: input, shape index: {}]   ;;  %s654_s1 = inlined_call_operand.vmem [shape: bf16[64,32], index: 1, kind: input, shape index: {}]   ;;  %s655_s2 = inlined_call_operand.vmem [shape: f32[3,32], index: 2, kind: input, shape index: {}]   ;;  %s656_s3 = inlined_call_operand.hbm [shape: f32[32,32], index: 3, kind: output, shape index: {}]  }
   0x1   :  { %10 = vsyncpa [#allocation3 + $0x1], 0  ;;  %s539_s12 = smov 0   ;;  %s541_s13 = smov 0  }
   0x2   :  { %s543_s14 = smov 0   ;;  %s545_s15 = smov 0  }
   0x3 LB: > { %s560_s16 = sadd.s32 4294967295, %s515_s15   ;;  %s369_s17 = sadd.s32 4294967294, %s515_s15   ;;  %s515_s15 = sphi %s545_s15, %s662_s15   ;;  %s511_s14 = sphi %s543_s14, %s661_s14   ;;  %s507_s13 = sphi %s541_s13, %s660_s13   ;;  %s503_s12 = sphi %s539_s12, %s659_s12  }
   0x4   : > { %s564_s18 = sadd.s32 1, %s515_s15   ;;  %s91_s19 = sadd.s32 1, %s511_s14 }
   0x5   : > { %s88_s20 = ssub.s32 %s515_s15, %s564_s18  ;;  %p101_p0 = scmp.ne.s32.totalorder %s511_s14, %s507_s13 }
   0x6   : > { %p89_p1 = scmp.eq.s32.totalorder %s88_s20, 0  ;;  %p102_p2 = scmp.eq.s32.totalorder %s560_s16, 1 }
   0x7   : > { %p107_p3 = scmp.ne.s32.totalorder %s507_s13, %s503_s12  ;;  %p108_p4 = scmp.eq.s32.totalorder %s369_s17, 1 }
   0x8   : > { %s575_s21 = scalar_select %p89_p1, %s511_s14, %s91_s19  }
   0x9   : > { %p577_p5 = por %p102_p2, %p101_p0  ;;  %p581_p6 = por %p108_p4, %p107_p3 }
   0xa   : > { %p372_p7 = scmp.ge.s32.totalorder %s515_s15, 1  ;;  %p141_p8 = scmp.lt.s32.totalorder %s515_s15, 3 }
   0xc   : > { %p142_p9 = pnand %p372_p7, %p141_p8 }
   0xd   : > { %s374_s26 = sshll.u32 (!%p142_p9), %s560_s16, 1  ;;  %s162_s17 = sand.u32 (!%p142_p9), 1, %s507_s13  }
   0xe   : > { %145 = sbr.rel (%p142_p9) target bundleno = 326 (0x146), region = 32  ;;  %p166_p10 = scmp.lt.s32.totalorder (!%p142_p9), %s374_s26, 3 }
   0xf   : > { %s373_s19 = sshll.u32 (!%p142_p9), %s162_s17, 4  ;;  %s407_s20 = sshll.u32 (!%p142_p9), %s560_s16, 4 }
  0x10   : > { %s164_s24 = scalar_lea.vmem (!%p142_p9), [#allocation2], %s373_s19  ;;  %s303_s27 = scalar_lea.hbm (!%p142_p9), %s656_s3, %s407_s20 }
  0x11   : > { %s304_s28 = sshll.u32 (!%p142_p9), %s164_s24, 4  ;;  %s306_s16 = sshll.u32 (!%p142_p9), %s303_s27, 4  ;;  %s305_s28 = int_to_ptr.vmem [resolvable:$true] %s304_s28  ;;  %s307_s16 = int_to_ptr.hbm [resolvable:$true] %s306_s16 }
  0x12   : > { %s292_s29 = scalar_lea.sflag (!%p142_p9), [#allocation3], %s162_s17  ;;  %s467_s30 = sshra.s32 (!%p142_p9), %s307_s16, 4  ;;  %s468_s30 = int_to_ptr.hbm [resolvable:$true] %s467_s30 }
  0x13   : > { %v406_v0 = vld [vmem:[%s654_s1 + $0x18] sm:$0xff]  ;;  %v405_v1 = vld [vmem:[%s654_s1 + $0x10] sm:$0xff]  ;;  %s664_s26 = smov (!%p166_p10, %s374_s26), 3  ;;  %v404_v2 = vld [vmem:[%s654_s1 + $0x8] sm:$0xff]  ;;  %vm214_vm0 = vcmask 523264   ;;  %vm232_vm1 = vcmask 261120   ;;  %p474_p0 = scmp.lt.s32.totalorder %s468_s30, %s656_s3 }
  0x14   : > { %222 = vmatpush.bf16.msra.mxu0 %v406_v0  ;;  %s375_s4 = sshll.u32 %s664_s26, 2  ;;  %v403_v3 = vld [vmem:[%s654_s1] sm:$0xff]  ;;  %s473_s7 = scalar_lea.hbm %s656_s3, 32 }
  0x15   : > { %s169_s9 = scalar_lea.vmem %s653_s0, %s375_s4  ;;  %v606_v5 = vld [vmem:[%s655_s2] sm:$0x7]  ;;  %s469_s4 = scalar_lea.hbm %s468_s30, 16 }
  0x16   : > { %v402_v4 = vld [vmem:[%s169_s9] sm:$0xff]  ;;  %v184_v6 = vperm.slane %v606_v5, 0  ;;  %v283_v40 = vperm.slane %v606_v5, 1  ;;  %v286_v44 = vperm.slane %v606_v5, 2  ;;  %p470_p11 = scmp.ne.s32.totalorder %s468_s30, %s469_s4  ;;  %p475_p1 = scmp.lt.s32.totalorder %s473_s7, %s469_s4 }
  0x18   : > { %223 = vmatpush.bf16.msra.mxu0 %v405_v1  ;;  %p471_p12 = pnand %p470_p11, %p577_p5  ;;  %p476_p2 = por %p475_p1, %p474_p0 }
  0x1a   : > { %p472_p13 = pneg %p471_p12 }
  0x1c   : > { %224 = vmatpush.bf16.msra.mxu0 %v404_v2  ;;  %p477_p3 = pnand %p476_p2, %p472_p13 }
  0x20   : > { %225 = vmatpush.bf16.msra.mxu0 %v403_v3 }
  0x23   : > { %396 = vmatmul.msk.bf16.vlgmr.msra.gmra.mxu0 %vm214_vm0, %v402_v4 }
  0xa0   : > { %v227_v7 = vpop.f32.mrf.mxu0 }
  0xa1   : > { %v228_v8 = vadd.f32 %v227_v7, %v184_v6 }
  0xa3   : > { %v233_v9 = vsel %vm232_vm1, %v228_v8, 0.0  ;;  %v241_v10 = vmul.f32 %v228_v8, %v228_v8 }
  0xa4   : > { %234 = vadd.xlane.f32.xlu0 %v233_v9 }
  0xa5   : > { %v243_v11 = vsel %vm232_vm1, %v241_v10, 0.0 }
  0xa6   : > { %244 = vadd.xlane.f32.xlu1 %v243_v11 }
  0xa8   : > { %v229_v12 = vpop.f32.mrf.mxu0 }
  0xa9   : > { %v230_v13 = vadd.f32 %v229_v12, %v184_v6 }
  0xab   : > { %v236_v14 = vsel %vm232_vm1, %v230_v13, 0.0  ;;  %v242_v15 = vmul.f32 %v230_v13, %v230_v13 }
  0xac   : > { %237 = vadd.xlane.f32.xlu0 %v236_v14 }
  0xad   : > { %v246_v16 = vsel %vm232_vm1, %v242_v15, 0.0 }
  0xae   : > { %247 = vadd.xlane.f32.xlu1 %v246_v16 }
 0x117   : > { %v235_v17 = vpop.xlane.xlu0 %234 }
 0x118   : > { %v239_v18 = vmul.f32 0.03125, %v235_v17 }
 0x119   : > { %v245_v19 = vpop.xlane.xlu1 %244 }
 0x11a   : > { %v251_v20 = vmul.f32 %v239_v18, %v239_v18  ;;  %v249_v21 = vmul.f32 0.03125, %v245_v19  ;;  %v257_v41 = vsub.f32 %v228_v8, %v239_v18 }
 0x11c   : > { %v253_v22 = vsub.f32 %v249_v21, %v251_v20 }
 0x11e   : > { %v255_v23 = vmax.f32 %v253_v22, 0.0 }
 0x11f   : > { %v238_v24 = vpop.xlane.xlu0 %237 }
 0x120   : > { %v259_v25 = vadd.f32 1e-05, %v255_v23  ;;  %v240_v26 = vmul.f32 0.03125, %v238_v24 }
 0x121   : > { %v248_v27 = vpop.xlane.xlu1 %247 }
 0x122   : > { %449 = vrsqrt.f32 %v259_v25  ;;  %v252_v28 = vmul.f32 %v240_v26, %v240_v26  ;;  %v250_v29 = vmul.f32 0.03125, %v248_v27  ;;  %vm267_vm3 = vweird.f32 %v259_v25 }
 0x123   : > { %v258_v52 = vsub.f32 %v230_v13, %v240_v26 }
 0x124   : > { %v254_v30 = vsub.f32 %v250_v29, %v252_v28 }
 0x126   : > { %v256_v31 = vmax.f32 %v254_v30, 0.0 }
 0x128   : > { %v450_v32 = vpop.eup %449  ;;  %v260_v34 = vadd.f32 1e-05, %v256_v31 }
 0x129   : > { %v262_v33 = vmul.f32 %v450_v32, %v259_v25  ;;  %vm268_vm2 = vweird.f32 %v450_v32 }
 0x12a   : > { %451 = vrsqrt.f32 %v260_v34  ;;  %vm269_vm4 = vmor %vm267_vm3, %vm268_vm2  ;;  %vm277_vm6 = vweird.f32 %v260_v34 }
 0x12b   : > { %v263_v35 = vmul.f32 %v450_v32, %v262_v33 }
 0x12d   : > { %v264_v36 = vmul.f32 0.5, %v263_v35 }
 0x12f   : > { %v265_v37 = vsub.f32 1.5, %v264_v36 }
 0x130   : > { %v452_v38 = vpop.eup %451 }
 0x131   : > { %v266_v39 = vmul.f32 %v450_v32, %v265_v37  ;;  %v272_v42 = vmul.f32 %v452_v38, %v260_v34  ;;  %vm278_vm5 = vweird.f32 %v452_v38 }
 0x132   : > { %vm279_vm7 = vmor %vm277_vm6, %vm278_vm5 }
 0x133   : > { %v270_v43 = vsel %vm269_vm4, %v450_v32, %v266_v39  ;;  %v273_v46 = vmul.f32 %v452_v38, %v272_v42 }
 0x134   : > { %v281_v45 = vmul.f32 %v270_v43, %v257_v41 }
 0x135   : > { %v274_v48 = vmul.f32 0.5, %v273_v46 }
 0x136   : > { %v284_v47 = vmul.f32 %v283_v40, %v281_v45 }
 0x137   : > { %v275_v49 = vsub.f32 1.5, %v274_v48 }
 0x138   : > { %v287_v50 = vadd.f32 %v286_v44, %v284_v47 }
 0x139   : > { %v276_v51 = vmul.f32 %v452_v38, %v275_v49 }
 0x13a   : > { %289 = vst.msk [vmem:[%s164_s24] sm:$0xff] %vm232_vm1, %v287_v50 }
 0x13b   : > { %v280_v53 = vsel %vm279_vm7, %v452_v38, %v276_v51 }
 0x13c   : > { %v282_v54 = vmul.f32 %v280_v53, %v258_v52 }
 0x13e   : > { %v285_v55 = vmul.f32 %v283_v40, %v282_v54 }
 0x140   : > { %v288_v56 = vadd.f32 %v286_v44, %v285_v55 }
 0x142   : > { %290 = vst.msk [vmem:[%s164_s24 + $0x8] sm:$0xff] %vm232_vm1, %v288_v56 }
 0x143   : > { %480 = shalt.err (!%p477_p3)
}
 0x144   : > { %s517_s10 = smov 128   ;;  %s518_s11 = smov 8  }
 0x145   : > { %408 = dma.vmem_to_hbm [thread:$0]  (%p577_p5), %s305_s28, 256, %s307_s16, %s292_s29, %s517_s10, %s517_s10, %s518_s11  }
 0x146 PF: > { %p414_p4 = scmp.ge.s32.totalorder %s515_s15, 2  ;;  %s321_s17 = sand.u32 1, %s503_s12  }
 0x147   : > { %s322_s19 = scalar_lea.sflag [#allocation3], %s321_s17 }
 0x148   : > { %p411_p7 = pnand %p414_p4, %p581_p6 }
 0x14a   : > { %p412_p8 = pneg %p411_p7 }
 0x14c   : > { %498 = dma.done.wait (%p412_p8), %s322_s19, 256  }
 0x14d   : > { %500 = vsyncadd (%p412_p8), %s322_s19, 4294967040  ;;  %p13_p9 = scmp.ge.s32.totalorder %s564_s18, 4   ;;  %s659_s12 = smov %s507_s13 }
 0x14e   : > { %s660_s13 = smov %s511_s14  ;;  %s661_s14 = smov %s575_s21 }
 0x14f   : > { %s662_s15 = smov %s564_s18  ;;  %15 = sbr.rel (!%p13_p9) target bundleno = 3 (0x3), region = 67 }
 0x154   :  { %328 = vsyncpa [#allocation3], 1 }
 0x155   :  { %330 = vsyncpa [#allocation3 + $0x1], 1 }

</bundles_post_ra>
